<compile_context>
chip_gen: v7x
topology: tpu7x:2x2x1
jax: 0.10.0
libtpu: 0.0.40
codegen_flags: <defaults>
</compile_context>

<pallas_src>
import jax
import jax.numpy as jnp
from jax import lax
from jax.experimental import pallas as pl
from jax.experimental.pallas import tpu as pltpu


# ----------------------------------------------------------------------------
# Kernel
# ----------------------------------------------------------------------------
def _gpt2_mlp_kernel(x_ref, wfct_ref, bfc_ref, wproj_ref, bproj_ref,
                     o_ref, acc_ref):
    # x_ref:     (TM, C)        block of flattened activations (compute dtype)
    # wfct_ref:  (TN, C)        contiguous row block of w_fc^T (compute dtype)
    # bfc_ref:   (1, TN)        slice of c_fc bias (f32)
    # wproj_ref: (TN, C)        contiguous row block of c_proj weight
    # bproj_ref: (1, C)         c_proj bias (f32)
    # o_ref:     (TM, C)        output block
    # acc_ref:   (TM, C) f32    VMEM accumulator (persists across hidden tiles)
    j = pl.program_id(1)

    @pl.when(j == 0)
    def _init():
        # Fold the output-projection bias into the accumulator init.
        acc_ref[...] = jnp.broadcast_to(
            bproj_ref[...].astype(jnp.float32), acc_ref.shape)

    # c_fc on this hidden slice: (TM, C) x (TN, C) contracted over C -> (TM, TN),
    # f32 accumulation on the MXU.
    h = lax.dot_general(
        x_ref[...], wfct_ref[...],
        dimension_numbers=(((1,), (1,)), ((), ())),
        preferred_element_type=jnp.float32)
    h = h + bfc_ref[...].astype(jnp.float32)

    # GELU, tanh approximation (matches torch.nn.GELU(approximate='tanh')).
    # Kept in f32; tanh goes to the EUP slot.
    c0 = jnp.float32(0.7978845608028654)   # sqrt(2/pi)
    c1 = jnp.float32(0.044715)
    h2 = h * h
    inner = h * (1.0 + c1 * h2)
    g = 0.5 * h * (1.0 + jnp.tanh(c0 * inner))

    # c_proj partial: (TM, TN) @ (TN, C) -> accumulate into (TM, C) f32.
    acc_ref[...] += jnp.dot(g.astype(wproj_ref.dtype), wproj_ref[...],
                            preferred_element_type=jnp.float32)

    @pl.when(j == pl.num_programs(1) - 1)
    def _finalize():
        o_ref[...] = acc_ref[...].astype(o_ref.dtype)


# ----------------------------------------------------------------------------
# Tile / VMEM budgeting
# ----------------------------------------------------------------------------
def _round_up(x, m):
    return ((x + m - 1) // m) * m


def _vmem_budget_bytes():
    """~3/4 of per-core VMEM; conservative 48 MiB fallback (safe on v7x)."""
    cap = 64 * 1024 * 1024
    try:
        info = pltpu.get_tpu_info()
        cap = int(getattr(info, "vmem_capacity_bytes", cap) or cap)
    except Exception:
        pass
    return int(cap * 3 // 4)


def _footprint(tm, tn, C, in_bytes, out_bytes):
    """Conservative VMEM estimate for one (tm, tn) tile plan (double buffers)."""
    x_buf = 2 * tm * C * in_bytes
    o_buf = 2 * tm * C * out_bytes
    w_buf = 2 * 2 * tn * C * in_bytes          # w_fc^T + w_proj slices
    b_buf = 2 * (tn + C) * 4
    acc = tm * C * 4
    temps = tm * tn * (8 + in_bytes)           # f32 intermediates + bf16 cast
    return x_buf + o_buf + w_buf + b_buf + acc + temps


def _choose_tiles(M, C, H, in_bytes, out_bytes, budget):
    row_align = 16 if in_bytes < 4 else 8
    m_cap = _round_up(M, row_align)
    tm_cands = [t for t in (1024, 512, 256, 128, 64, 32, 16, 8)
                if row_align <= t <= m_cap]
    if not tm_cands:
        tm_cands = [row_align]

    def fits(tm, tn):
        return _footprint(tm, tn, C, in_bytes, out_bytes) <= budget

    # 1) Weights fully VMEM-resident (tn == H): weights DMA'd from HBM once.
    for tm in tm_cands:
        if fits(tm, H):
            # v7x: give the "parallel" row axis >= 2 steps when M allows so both
            # TensorCores get work (free here: resident weights, no re-stream).
            while tm > row_align and (m_cap // tm) < 2 and m_cap >= 2 * row_align:
                tm //= 2
            return tm, H

    # 2) Hidden-tiled: maximize tm (weight re-stream factor is M/tm), tn >= 256.
    tn_cands = [t for t in (2048, 1024, 512, 256) if t < H and H % t == 0]
    for tm in tm_cands:
        for tn in tn_cands:
            if fits(tm, tn):
                return tm, tn

    # 3) Last resort: tn = 128 (or full H if H is not 128-divisible).
    tn_small = 128 if (H % 128 == 0 and H > 128) else H
    for tm in tm_cands:
        if fits(tm, tn_small):
            return tm, tn_small
    return tm_cands[-1], tn_small


# ----------------------------------------------------------------------------
# Wrapper
# ----------------------------------------------------------------------------
def gpt2_mlp(x, w_fc, b_fc, w_proj, b_proj, *,
             compute_dtype=jnp.bfloat16, _force_tiles=None):
    """y = c_proj(gelu_tanh(c_fc(x))).

    x: (..., C); w_fc: (C, 4C); b_fc: (4C,); w_proj: (4C, C); b_proj: (C,)
    compute_dtype: dtype for the MXU inputs (accumulation is always f32).
    """
    orig_shape = x.shape
    out_dtype = x.dtype
    C = orig_shape[-1]
    H = w_fc.shape[-1]                       # 4 * C
    x2 = x.reshape(-1, C)
    M = x2.shape[0]

    if compute_dtype is None:
        compute_dtype = x.dtype
    compute_dtype = jnp.dtype(compute_dtype)

    x2 = x2.astype(compute_dtype)
    # One-time transpose so the per-step w_fc tile is a contiguous (tn, C)
    # row block in HBM (same layout as w_proj's tile).
    w_fc_t = jnp.transpose(w_fc).astype(compute_dtype)     # (H, C)
    w_proj_c = w_proj.astype(compute_dtype)                # (H, C)

    # Biases stay f32; they are added to the f32 accumulator.
    b_fc2 = b_fc.reshape(1, H).astype(jnp.float32)
    b_proj2 = b_proj.reshape(1, C).astype(jnp.float32)

    in_bytes = compute_dtype.itemsize
    out_bytes = jnp.dtype(out_dtype).itemsize
    budget = _vmem_budget_bytes()

    if _force_tiles is not None:
        tm, tn = _force_tiles
        assert tm % 8 == 0 and H % tn == 0 and (tn % 128 == 0 or tn == H)
    else:
        tm, tn = _choose_tiles(M, C, H, in_bytes, out_bytes, budget)

    # Pad rows so M divides evenly into tm-sized tiles (padded rows discarded).
    m_pad = pl.cdiv(M, tm) * tm
    if m_pad != M:
        x2 = jnp.pad(x2, ((0, m_pad - M), (0, 0)))

    grid = (m_pad // tm, H // tn)

    out = pl.pallas_call(
        _gpt2_mlp_kernel,
        out_shape=jax.ShapeDtypeStruct((m_pad, C), out_dtype),
        grid_spec=pltpu.PrefetchScalarGridSpec(
            num_scalar_prefetch=0,
            grid=grid,
            in_specs=[
                pl.BlockSpec((tm, C), lambda i, j: (i, 0)),    # x rows
                pl.BlockSpec((tn, C), lambda i, j: (j, 0)),    # w_fc^T row block
                pl.BlockSpec((1, tn), lambda i, j: (0, j)),    # b_fc slice
                pl.BlockSpec((tn, C), lambda i, j: (j, 0)),    # w_proj row block
                pl.BlockSpec((1, C), lambda i, j: (0, 0)),     # b_proj
            ],
            out_specs=pl.BlockSpec((tm, C), lambda i, j: (i, 0)),
            scratch_shapes=[pltpu.VMEM((tm, C), jnp.float32)],
        ),
        compiler_params=pltpu.CompilerParams(
            dimension_semantics=("parallel", "arbitrary"),
            vmem_limit_bytes=int(budget),
        ),
    )(x2, w_fc_t, b_fc2, w_proj_c, b_proj2)

    if m_pad != M:
        out = out[:M]
    return out.reshape(orig_shape)


# ----------------------------------------------------------------------------
# Pure-JAX reference
# ----------------------------------------------------------------------------
def _reference(x, w_fc, b_fc, w_proj, b_proj):
    h = jnp.einsum("...c,ch->...h", x, w_fc) + b_fc
    h = 0.5 * h * (1.0 + jnp.tanh(
        jnp.sqrt(2.0 / jnp.pi) * (h + 0.044715 * h ** 3)))
    return jnp.einsum("...h,hc->...c", h, w_proj) + b_proj


if __name__ == "__main__":
    # Small config consistent with the module: B=2, T=8, n_embd=32 -> hidden=128.
    B, T, C = 2, 8, 32
    H = 4 * C

    key = jax.random.PRNGKey(0)
    kx, k1, k2, k3, k4 = jax.random.split(key, 5)
    x = jax.random.normal(kx, (B, T, C), dtype=jnp.float32)
    w_fc = jax.random.normal(k1, (C, H), dtype=jnp.float32) * 0.02
    b_fc = jax.random.normal(k2, (H,), dtype=jnp.float32) * 0.02
    w_proj = jax.random.normal(k3, (H, C), dtype=jnp.float32) * 0.02
    b_proj = jax.random.normal(k4, (C,), dtype=jnp.float32) * 0.02

    ref = _reference(x, w_fc, b_fc, w_proj, b_proj)

    # Default path: bf16 matmuls, f32 accumulation (looser tolerance).
    out = jax.block_until_ready(gpt2_mlp(x, w_fc, b_fc, w_proj, b_proj))
    assert out.shape == (B, T, C) and out.dtype == x.dtype
    assert jnp.allclose(out, ref, atol=3e-2, rtol=3e-2), "bf16 mismatch vs reference"

    # Full f32 path, tight tolerance.
    out_f32 = jax.block_until_ready(
        gpt2_mlp(x, w_fc, b_fc, w_proj, b_proj, compute_dtype=jnp.float32))
    assert jnp.allclose(out_f32, ref, atol=1e-4, rtol=1e-4), "f32 mismatch vs reference"

    # Non-divisible M exercises the row-padding path.
    x_odd = jax.random.normal(jax.random.PRNGKey(2), (3, 7, C), dtype=jnp.float32)
    ref_odd = _reference(x_odd, w_fc, b_fc, w_proj, b_proj)
    out_odd = jax.block_until_ready(
        gpt2_mlp(x_odd, w_fc, b_fc, w_proj, b_proj, compute_dtype=jnp.float32))
    assert out_odd.shape == (3, 7, C)
    assert jnp.allclose(out_odd, ref_odd, atol=1e-4, rtol=1e-4), "padded-M mismatch"

    # Larger case; force multi-step hidden accumulation (grid = (4, 4)).
    B2, T2, C2 = 2, 128, 256
    H2 = 4 * C2
    k5, k6, k7, k8, k9 = jax.random.split(jax.random.PRNGKey(1), 5)
    x_l = jax.random.normal(k5, (B2, T2, C2), dtype=jnp.float32)
    w_fc_l = jax.random.normal(k6, (C2, H2), dtype=jnp.float32) * 0.02
    b_fc_l = jax.random.normal(k7, (H2,), dtype=jnp.float32) * 0.02
    w_proj_l = jax.random.normal(k8, (H2, C2), dtype=jnp.float32) * 0.02
    b_proj_l = jax.random.normal(k9, (C2,), dtype=jnp.float32) * 0.02
    ref_l = _reference(x_l, w_fc_l, b_fc_l, w_proj_l, b_proj_l)

    out_l = jax.block_until_ready(
        gpt2_mlp(x_l, w_fc_l, b_fc_l, w_proj_l, b_proj_l,
                 compute_dtype=jnp.float32, _force_tiles=(64, 256)))
    assert out_l.shape == (B2, T2, C2)
    assert jnp.allclose(out_l, ref_l, atol=1e-3, rtol=1e-3), "multi-tile f32 mismatch"

    # Same case through the auto-tiled default (bf16, weights-resident) path.
    out_l_bf = jax.block_until_ready(
        gpt2_mlp(x_l, w_fc_l, b_fc_l, w_proj_l, b_proj_l))
    assert jnp.allclose(out_l_bf, ref_l, atol=3e-2, rtol=3e-2), "auto-tile bf16 mismatch"

    print("KERNEL_OK")
</pallas_src>

<mosaic_0001>
module attributes {stable_mosaic.version = 11 : i64} {
  func.func @_gpt2_mlp_kernel(%arg0: i32, %arg1: i32, %arg2: memref<16x32xbf16, #tpu.memory_space<vmem>>, %arg3: memref<128x32xbf16, #tpu.memory_space<vmem>>, %arg4: memref<1x128xf32, #tpu.memory_space<vmem>>, %arg5: memref<128x32xbf16, #tpu.memory_space<vmem>>, %arg6: memref<1x32xf32, #tpu.memory_space<vmem>>, %arg7: memref<16x32xf32, #tpu.memory_space<vmem>>, %arg8: memref<16x32xf32, #tpu.memory_space<vmem>>) attributes {dimension_semantics = [#tpu.dimension_semantics<parallel>, #tpu.dimension_semantics<arbitrary>], iteration_bounds = array<i64: 1, 1>, scalar_prefetch = 0 : i64, scratch_operands = 1 : i64, tpu.core_type = #tpu.core_type<tc>, window_params = [{transform_indices = @transform_0, window_bounds = array<i64: 16, 32>}, {transform_indices = @transform_1, window_bounds = array<i64: 128, 32>}, {transform_indices = @transform_2, window_bounds = array<i64: 1, 128>}, {transform_indices = @transform_3, window_bounds = array<i64: 128, 32>}, {pipeline_mode = #tpu.pipeline_mode<synchronous>, transform_indices = @transform_4, window_bounds = array<i64: 1, 32>}, {transform_indices = @transform_5, window_bounds = array<i64: 16, 32>}]} {
    %c0_i32 = arith.constant 0 : i32
    %0 = arith.cmpi eq, %arg1, %c0_i32 : i32
    %1 = arith.extui %0 : i1 to i32
    %c0_i32_0 = arith.constant 0 : i32
    %2 = arith.cmpi ne, %1, %c0_i32_0 : i32
    scf.if %2 {
      %c0_20 = arith.constant 0 : index
      %c0_21 = arith.constant 0 : index
      %32 = vector.load %arg6[%c0_20, %c0_21] : memref<1x32xf32, #tpu.memory_space<vmem>>, vector<1x32xf32>
      %33 = vector.shape_cast %32 : vector<1x32xf32> to vector<1x32xf32>
      %34 = vector.broadcast %33 : vector<1x32xf32> to vector<16x32xf32>
      %c0_22 = arith.constant 0 : index
      %c0_23 = arith.constant 0 : index
      %35 = vector.load %arg8[%c0_22, %c0_23] : memref<16x32xf32, #tpu.memory_space<vmem>>, vector<16x32xf32>
      tpu.vector_store %arg8[%c0_22, %c0_23], %34 {strides = array<i32>} : memref<16x32xf32, #tpu.memory_space<vmem>>, vector<16x32xf32>,
    } else {
    }
    %c0 = arith.constant 0 : index
    %c0_1 = arith.constant 0 : index
    %3 = vector.load %arg2[%c0, %c0_1] : memref<16x32xbf16, #tpu.memory_space<vmem>>, vector<16x32xbf16>
    %c0_2 = arith.constant 0 : index
    %c0_3 = arith.constant 0 : index
    %4 = vector.load %arg3[%c0_2, %c0_3] : memref<128x32xbf16, #tpu.memory_space<vmem>>, vector<128x32xbf16>
    %cst = arith.constant dense<0.000000e+00> : vector<16x128xf32>
    %5 = tpu.matmul %3, %4, %cst {dimension_numbers = #tpu.dot_dimension_numbers<[1], [1], [0], [0], [0, 0, 1, 0], [], []>} : vector<16x32xbf16>, vector<128x32xbf16>, vector<16x128xf32> -> vector<16x128xf32>
    %c0_4 = arith.constant 0 : index
    %c0_5 = arith.constant 0 : index
    %6 = vector.load %arg4[%c0_4, %c0_5] : memref<1x128xf32, #tpu.memory_space<vmem>>, vector<1x128xf32>
    %7 = vector.broadcast %6 : vector<1x128xf32> to vector<16x128xf32>
    %8 = arith.addf %5, %7 : vector<16x128xf32>
    %9 = arith.mulf %8, %8 : vector<16x128xf32>
    %cst_6 = arith.constant 4.471500e-02 : f32
    %10 = vector.broadcast %cst_6 : f32 to vector<16x128xf32>
    %11 = arith.mulf %10, %9 : vector<16x128xf32>
    %cst_7 = arith.constant 1.000000e+00 : f32
    %12 = vector.broadcast %cst_7 : f32 to vector<16x128xf32>
    %13 = arith.addf %12, %11 : vector<16x128xf32>
    %14 = arith.mulf %8, %13 : vector<16x128xf32>
    %cst_8 = arith.constant 5.000000e-01 : f32
    %15 = vector.broadcast %cst_8 : f32 to vector<16x128xf32>
    %16 = arith.mulf %15, %8 : vector<16x128xf32>
    %cst_9 = arith.constant 0.797884583 : f32
    %17 = vector.broadcast %cst_9 : f32 to vector<16x128xf32>
    %18 = arith.mulf %17, %14 : vector<16x128xf32>
    %19 = math.tanh %18 : vector<16x128xf32>
    %cst_10 = arith.constant 1.000000e+00 : f32
    %20 = vector.broadcast %cst_10 : f32 to vector<16x128xf32>
    %21 = arith.addf %20, %19 : vector<16x128xf32>
    %22 = arith.mulf %16, %21 : vector<16x128xf32>
    %c0_11 = arith.constant 0 : index
    %c0_12 = arith.constant 0 : index
    %23 = vector.load %arg8[%c0_11, %c0_12] : memref<16x32xf32, #tpu.memory_space<vmem>>, vector<16x32xf32>
    %24 = arith.truncf %22 : vector<16x128xf32> to vector<16x128xbf16>
    %c0_13 = arith.constant 0 : index
    %c0_14 = arith.constant 0 : index
    %25 = vector.load %arg5[%c0_13, %c0_14] : memref<128x32xbf16, #tpu.memory_space<vmem>>, vector<128x32xbf16>
    %cst_15 = arith.constant dense<0.000000e+00> : vector<16x32xf32>
    %26 = tpu.matmul %24, %25, %cst_15 {dimension_numbers = #tpu.dot_dimension_numbers<[1], [0], [0], [1], [0, 0, 1, 1], [], []>} : vector<16x128xbf16>, vector<128x32xbf16>, vector<16x32xf32> -> vector<16x32xf32>
    %27 = arith.addf %23, %26 : vector<16x32xf32>
    %c0_16 = arith.constant 0 : index
    %c0_17 = arith.constant 0 : index
    %28 = vector.load %arg8[%c0_16, %c0_17] : memref<16x32xf32, #tpu.memory_space<vmem>>, vector<16x32xf32>
    tpu.vector_store %arg8[%c0_16, %c0_17], %27 {strides = array<i32>} : memref<16x32xf32, #tpu.memory_space<vmem>>, vector<16x32xf32>,
    %c0_i32_18 = arith.constant 0 : i32
    %29 = arith.cmpi eq, %arg1, %c0_i32_18 : i32
    %30 = arith.extui %29 : i1 to i32
    %c0_i32_19 = arith.constant 0 : i32
    %31 = arith.cmpi ne, %30, %c0_i32_19 : i32
    scf.if %31 {
      %c0_20 = arith.constant 0 : index
      %c0_21 = arith.constant 0 : index
      %32 = vector.load %arg8[%c0_20, %c0_21] : memref<16x32xf32, #tpu.memory_space<vmem>>, vector<16x32xf32>
      %c0_22 = arith.constant 0 : index
      %c0_23 = arith.constant 0 : index
      %33 = vector.load %arg7[%c0_22, %c0_23] : memref<16x32xf32, #tpu.memory_space<vmem>>, vector<16x32xf32>
      tpu.vector_store %arg7[%c0_22, %c0_23], %32 {strides = array<i32>} : memref<16x32xf32, #tpu.memory_space<vmem>>, vector<16x32xf32>,
    } else {
    }
    return
  }
  func.func @transform_0(%arg0: i32, %arg1: i32) -> (i32, i32) {
    %c0_i32 = arith.constant 0 : i32
    %c0_i32_0 = arith.constant 0 : i32
    return %arg0, %c0_i32 : i32, i32
  }
  func.func @transform_1(%arg0: i32, %arg1: i32) -> (i32, i32) {
    %c0_i32 = arith.constant 0 : i32
    %c0_i32_0 = arith.constant 0 : i32
    return %arg1, %c0_i32 : i32, i32
  }
  func.func @transform_2(%arg0: i32, %arg1: i32) -> (i32, i32) {
    %c0_i32 = arith.constant 0 : i32
    %c0_i32_0 = arith.constant 0 : i32
    return %c0_i32, %arg1 : i32, i32
  }
  func.func @transform_3(%arg0: i32, %arg1: i32) -> (i32, i32) {
    %c0_i32 = arith.constant 0 : i32
    %c0_i32_0 = arith.constant 0 : i32
    return %arg1, %c0_i32 : i32, i32
  }
  func.func @transform_4(%arg0: i32, %arg1: i32) -> (i32, i32) {
    %c0_i32 = arith.constant 0 : i32
    %c0_i32_0 = arith.constant 0 : i32
    %c0_i32_1 = arith.constant 0 : i32
    return %c0_i32, %c0_i32_0 : i32, i32
  }
  func.func @transform_5(%arg0: i32, %arg1: i32) -> (i32, i32) {
    %c0_i32 = arith.constant 0 : i32
    %c0_i32_0 = arith.constant 0 : i32
    return %arg0, %c0_i32 : i32, i32
  }
}

</mosaic_0001>

<bundles_post_ra>
// kernel: tpu_custom_call.1
= control target key start
LH: loop header
LB: loop body
LE: loop exit
PB: predicated region body
PF: predicated region fallthrough
CT: control target
= control target key end

     0   :  { %vm33_vm0 = vcmask 261120   ;;  %v456_v0 = vmov 0.0   ;;  %vm457_vm1 = vmmov 0   ;;  %s575_s0 = inlined_call_operand.vmem [shape: bf16[16,32], index: 0, kind: input, shape index: {}]   ;;  %s576_s1 = inlined_call_operand.vmem [shape: bf16[128,32], index: 1, kind: input, shape index: {}]   ;;  %s577_s2 = inlined_call_operand.vmem [shape: f32[1,128], index: 2, kind: input, shape index: {}]   ;;  %s578_s3 = inlined_call_operand.vmem [shape: bf16[128,32], index: 3, kind: input, shape index: {}]   ;;  %s579_s4 = inlined_call_operand.vmem [shape: f32[1,32], index: 4, kind: input, shape index: {}]   ;;  %s580_s5 = inlined_call_operand.hbm [shape: f32[16,32], index: 5, kind: output, shape index: {}]  }
   0x1   :  { %366 = vmatprep.subr.bf16.mxu0 %v456_v0  ;;  %v411_v1 = vld [vmem:[%s576_s1] sm:$0xff]   ;;  %386 = vmatprep.subr.bf16.mxu1 %v456_v0  ;;  %v412_v3 = vld [vmem:[%s576_s1 + $0x8] sm:$0xff]   ;;  %v413_v5 = vld [vmem:[%s576_s1 + $0x10] sm:$0xff]  }
   0x2   :  { %382 = vmatprep.mubr.msk.bf16.mxu0 %vm457_vm1, %v456_v0  ;;  %402 = vmatprep.mubr.msk.bf16.mxu1 %vm457_vm1, %v456_v0  ;;  %v111_v2 = vsel %vm33_vm0, %v411_v1, 0  ;;  %v114_v4 = vsel %vm33_vm0, %v412_v3, 0 }
   0x3   :  { %367 = vmatpush3.bf16.xpose.msra.mxu0 %v111_v2 }
   0x4   :  { %368 = vmatprep.subr.bf16.mxu0 %v456_v0 }
   0xb   :  { %369 = vmatpush3.bf16.xpose.msra.mxu0 %v114_v4 }
   0xc   :  { %370 = vmatprep.subr.bf16.mxu0 %v456_v0 }
   0xd   :  { %10 = vsyncpa [#allocation4], 0  ;;  %v117_v6 = vsel %vm33_vm0, %v413_v5, 0  ;;  %v414_v7 = vld [vmem:[%s576_s1 + $0x18] sm:$0xff]   ;;  %v415_v9 = vld [vmem:[%s576_s1 + $0x20] sm:$0xff]  }
   0xe   :  { %v120_v8 = vsel %vm33_vm0, %v414_v7, 0  ;;  %v123_v10 = vsel %vm33_vm0, %v415_v9, 0  ;;  %v416_v11 = vld [vmem:[%s576_s1 + $0x28] sm:$0xff]   ;;  %v417_v13 = vld [vmem:[%s576_s1 + $0x30] sm:$0xff]   ;;  %v418_v15 = vld [vmem:[%s576_s1 + $0x38] sm:$0xff]  }
   0xf   :  { %v126_v12 = vsel %vm33_vm0, %v416_v11, 0  ;;  %v129_v14 = vsel %vm33_vm0, %v417_v13, 0  ;;  %v132_v16 = vsel %vm33_vm0, %v418_v15, 0  ;;  %v419_v17 = vld [vmem:[%s575_s0] sm:$0xff]   ;;  %v421_v19 = vld [vmem:[%s578_s3 + $0x8] sm:$0xff]   ;;  %v422_v20 = vld [vmem:[%s578_s3 + $0x10] sm:$0xff]  }
  0x10   :  { %v420_v18 = vld [vmem:[%s578_s3] sm:$0xff]   ;;  %v423_v21 = vld [vmem:[%s578_s3 + $0x18] sm:$0xff]   ;;  %v425_v23 = vld [vmem:[%s578_s3 + $0x28] sm:$0xff]  }
  0x11   :  { %387 = vmatpush3.bf16.msra.mxu1 %v420_v18  ;;  %v424_v22 = vld [vmem:[%s578_s3 + $0x20] sm:$0xff]   ;;  %v426_v24 = vld [vmem:[%s578_s3 + $0x30] sm:$0xff]   ;;  %v427_v25 = vld [vmem:[%s578_s3 + $0x38] sm:$0xff]  }
  0x12   :  { %388 = vmatprep.subr.bf16.mxu1 %v456_v0  ;;  %v328_v26 = vld [vmem:[%s579_s4] ss:$0 sm:$0xff] }
  0x13   :  { %371 = vmatpush3.bf16.xpose.msra.mxu0 %v117_v6  ;;  %34 = vst.msk [vmem:[#allocation2] sm:$0xff] %vm33_vm0, %v328_v26  ;;  %35 = vst.msk [vmem:[#allocation2 + $0x8] sm:$0xff] %vm33_vm0, %v328_v26  ;;  %v329_v27 = vld [vmem:[%s577_s2] ss:$0 sm:$0xff]  ;;  %s458_s2 = smov [#allocation3]  }
  0x14   :  { %372 = vmatprep.subr.bf16.mxu0 %v456_v0  ;;  %s317_s3 = sshll.u32 %s458_s2, 4  ;;  %s318_s3 = int_to_ptr.vmem [resolvable:$true] %s317_s3 }
  0x15   :  { %389 = vmatpush3.bf16.msra.mxu1 %v421_v19  ;;  %s432_s4 = scalar_lea.vmem %s318_s3, 256  ;;  %p437_p1 = scmp.lt.s32.totalorder %s318_s3, %s318_s3 }
  0x16   :  { %390 = vmatprep.subr.bf16.mxu1 %v456_v0  ;;  %p433_p0 = scmp.ne.s32.totalorder %s318_s3, %s432_s4  ;;  %p438_p2 = scmp.lt.s32.totalorder %s432_s4, %s432_s4 }
  0x18   :  { %p439_p3 = por %p438_p2, %p437_p1 }
  0x19   :  { %391 = vmatpush3.bf16.msra.mxu1 %v422_v20 }
  0x1a   :  { %392 = vmatprep.subr.bf16.mxu1 %v456_v0  ;;  %v193_v53 = vld [vmem:[#allocation2] sm:$0xff]  ;;  %v194_v55 = vld [vmem:[#allocation2 + $0x8] sm:$0xff]  ;;  %p440_p4 = pnand %p439_p3, %p433_p0 }
  0x1b   :  { %373 = vmatpush3.bf16.xpose.msra.mxu0 %v120_v8 }
  0x1c   :  { %374 = vmatprep.subr.bf16.mxu0 %v456_v0 }
  0x1d   :  { %393 = vmatpush3.bf16.msra.mxu1 %v423_v21 }
  0x1e   :  { %394 = vmatprep.subr.bf16.mxu1 %v456_v0 }
  0x21   :  { %395 = vmatpush3.bf16.msra.mxu1 %v424_v22 }
  0x22   :  { %396 = vmatprep.subr.bf16.mxu1 %v456_v0 }
  0x23   :  { %375 = vmatpush3.bf16.xpose.msra.mxu0 %v123_v10 }
  0x24   :  { %376 = vmatprep.subr.bf16.mxu0 %v456_v0 }
  0x25   :  { %397 = vmatpush3.bf16.msra.mxu1 %v425_v23 }
  0x26   :  { %398 = vmatprep.subr.bf16.mxu1 %v456_v0 }
  0x29   :  { %399 = vmatpush3.bf16.msra.mxu1 %v426_v24 }
  0x2a   :  { %400 = vmatprep.subr.bf16.mxu1 %v456_v0 }
  0x2b   :  { %377 = vmatpush3.bf16.xpose.msra.mxu0 %v126_v12 }
  0x2c   :  { %378 = vmatprep.subr.bf16.mxu0 %v456_v0 }
  0x2d   :  { %401 = vmatpush3.bf16.msra.mxu1 %v427_v25 }
  0x33   :  { %379 = vmatpush3.bf16.xpose.msra.mxu0 %v129_v14 }
  0x34   :  { %380 = vmatprep.subr.bf16.mxu0 %v456_v0 }
  0x3b   :  { %381 = vmatpush3.bf16.xpose.msra.mxu0 %v132_v16 }
  0x42   :  { %383 = vmatmul.mubr.msk.bf16.vlgmr.msra.gmra.mrb[0].mxu0 %vm33_vm0, %v419_v17 }
 0x115   :  { %v168_v28 = vpop.f32.mrb[0].mxu0 }
 0x116   :  { %v169_v29 = vadd.f32 %v329_v27, %v168_v28  ;;  %v384_v30 = vpop.f32.mrb[1].mxu0 }
 0x117   :  { %v171_v31 = vpop.f32.mrb[2].mxu0 }
 0x118   :  { %v175_v32 = vmul.f32 %v169_v29, %v169_v29  ;;  %v172_v33 = vadd.f32 %v329_v27, %v171_v31  ;;  %v385_v34 = vpop.f32.mrb[3].mxu0  ;;  %v183_v47 = vmul.f32 0.5, %v169_v29 }
 0x11a   :  { %v177_v35 = vmul.f32 0.044715, %v175_v32  ;;  %v176_v36 = vmul.f32 %v172_v33, %v172_v33  ;;  %v184_v48 = vmul.f32 0.5, %v172_v33 }
 0x11c   :  { %v179_v37 = vadd.f32 1.0, %v177_v35  ;;  %v178_v38 = vmul.f32 0.044715, %v176_v36 }
 0x11e   :  { %v181_v39 = vmul.f32 %v179_v37, %v169_v29  ;;  %v180_v40 = vadd.f32 1.0, %v178_v38 }
 0x120   :  { %v185_v41 = vmul.f32 0.7978846, %v181_v39  ;;  %v182_v42 = vmul.f32 %v180_v40, %v172_v33 }
 0x122   :  { %428 = vtanh.f32 %v185_v41  ;;  %v186_v43 = vmul.f32 0.7978846, %v182_v42 }
 0x124   :  { %430 = vtanh.f32 %v186_v43 }
 0x12c   :  { %v429_v44 = vpop.eup %428 }
 0x12d   :  { %v189_v45 = vadd.f32 1.0, %v429_v44 }
 0x12e   :  { %v431_v46 = vpop.eup %430 }
 0x12f   :  { %v190_v49 = vadd.f32 1.0, %v431_v46  ;;  %v191_v50 = vmul.f32 %v189_v45, %v183_v47 }
 0x131   :  { %v192_v51 = vmul.f32 %v190_v49, %v184_v48 }
 0x133   :  { %v195_v52 = vpack.c.bf16 %v192_v51, %v191_v50 }
 0x135   :  { %403 = vmatmul.mubr.bf16.vlgmr.msra.gmra.mrb[0].mxu1 %v195_v52 }
 0x208   :  { %v294_v54 = vpop.f32.mrb[0].mxu1 }
 0x209   :  { %v301_v56 = vadd.f32 %v294_v54, %v193_v53  ;;  %v404_v57 = vpop.f32.mrb[1].mxu1 }
 0x20a   :  { %v297_v58 = vpop.f32.mrb[2].mxu1 }
 0x20b   :  { %303 = vst.msk [vmem:[#allocation2] sm:$0xff] %vm33_vm0, %v301_v56  ;;  %v302_v59 = vadd.f32 %v297_v58, %v194_v55  ;;  %v405_v60 = vpop.f32.mrb[3].mxu1 }
 0x20d   :  { %304 = vst.msk [vmem:[#allocation2 + $0x8] sm:$0xff] %vm33_vm0, %v302_v59 }
 0x212   :  { %v308_v61 = vld [vmem:[#allocation2] sm:$0xff] }
 0x213   :  { %310 = vst.msk [vmem:[#allocation3] sm:$0xff] %vm33_vm0, %v308_v61 }
 0x214   :  { %v309_v62 = vld [vmem:[#allocation2 + $0x8] sm:$0xff] }
 0x215   :  { %311 = vst.msk [vmem:[#allocation3 + $0x8] sm:$0xff] %vm33_vm0, %v309_v62 }
 0x216   :  { %443 = shalt.err (!%p440_p4)
}
 0x217   :  { %s444_s6 = scalar_lea.hbm %s580_s5, 256 }
 0x218   :  { %p445_p5 = scmp.ne.s32.totalorder %s580_s5, %s444_s6  ;;  %p448_p6 = scmp.lt.u32.totalorder %s444_s6, %s580_s5 }
 0x21a   :  { %p450_p7 = pnand %p448_p6, %p445_p5 }
 0x21c   :  { %453 = shalt.err (!%p450_p7)
}
 0x21d   :  { %s459_s11 = smov 128   ;;  %s460_s12 = smov 8  }
 0x21e   :  { %323 = dma.vmem_to_hbm [thread:$0]  %s318_s3, 256, %s580_s5, [#allocation4], %s459_s11, %s459_s11, %s460_s12  }
 0x21f   :  { %454 = dma.done.wait [#allocation4], 256  }
 0x220   :  { %455 = vsyncadd [#allocation4], 4294967040 }
 0x221   :  { %327 = vsyncpa [#allocation4], 1 }

</bundles_post_ra>
